<compile_context>
chip_gen: v7x
topology: tpu7x:2x2x1
jax: 0.10.0
libtpu: 0.0.40
codegen_flags: <defaults>
</compile_context>

<pallas_src>
import jax
import jax.numpy as jnp
from jax.experimental import pallas as pl
from jax.experimental.pallas import tpu as pltpu

INPUT_SIZE = 784
HIDDEN_SIZE = 128
OUTPUT_SIZE = 10


def _cdiv(a, b):
    return (a + b - 1) // b


def _round_up(x, m):
    return _cdiv(x, m) * m


def mlp_kernel(x_ref, w1_ref, b1_ref, w2_ref, b2_ref, o_ref):
    # Cast the streamed x tile to bf16 in-kernel (no-op if already bf16);
    # fc1 runs on the MXU with f32 accumulation.
    x = x_ref[...].astype(jnp.bfloat16)
    h = jnp.dot(x, w1_ref[...], preferred_element_type=jnp.float32)
    h = jnp.maximum(h + b1_ref[...], 0.0)          # fused bias + ReLU (VPU)
    # fc2: tiny (tb,128)@(128,10) matmul kept in f32 for parity with PyTorch.
    out = jnp.dot(h, w2_ref[...], preferred_element_type=jnp.float32)
    o_ref[...] = out + b2_ref[...]


def feedforward_nn(x, w1, b1, w2, b2, *, tile_b=2048):
    """x: (B, 784); w1: (784, 128); b1: (1, 128); w2: (128, 10); b2: (1, 10)."""
    B = x.shape[0]
    out_dtype = x.dtype

    # --- Tile / grid selection -------------------------------------------
    # Round batch to the 128-row MXU granule first, then pick the number of
    # grid steps: enough to fit tile_b, and >=2 whenever possible so v7x's
    # two TensorCores both get work.  tb is then sized to the actual batch,
    # so padding waste stays <= ~128 rows per step (not up to tile_b-128).
    b128 = _round_up(max(B, 1), 128)
    n_steps = _cdiv(b128, tile_b)
    if b128 >= 256:
        n_steps = max(n_steps, 2)
    tb = _round_up(_cdiv(b128, n_steps), 128)
    b_pad = n_steps * tb

    # Only the batch dim is padded (no dtype change, no K padding); for
    # divisible batches this is a no-op.
    x_p = x if b_pad == B else jnp.pad(x, ((0, b_pad - B), (0, 0)))

    # Resident (grid-invariant) weights: W1 as bf16 (MXU operand), the rest f32.
    w1_r = w1.astype(jnp.bfloat16)
    b1_r = b1.reshape(1, HIDDEN_SIZE).astype(jnp.float32)
    w2_r = w2.astype(jnp.float32)
    b2_r = b2.reshape(1, OUTPUT_SIZE).astype(jnp.float32)

    x_bytes = x_p.dtype.itemsize
    cost = pl.CostEstimate(
        flops=2 * b_pad * (INPUT_SIZE * HIDDEN_SIZE + HIDDEN_SIZE * OUTPUT_SIZE),
        transcendentals=0,
        bytes_accessed=(b_pad * INPUT_SIZE * x_bytes            # x read
                        + b_pad * OUTPUT_SIZE * 4               # out write
                        + INPUT_SIZE * HIDDEN_SIZE * 2          # W1
                        + HIDDEN_SIZE * OUTPUT_SIZE * 4         # W2
                        + (HIDDEN_SIZE + OUTPUT_SIZE) * 4),     # biases
    )

    out = pl.pallas_call(
        mlp_kernel,
        out_shape=jax.ShapeDtypeStruct((b_pad, OUTPUT_SIZE), jnp.float32),
        grid=(n_steps,),
        in_specs=[
            pl.BlockSpec((tb, INPUT_SIZE), lambda i: (i, 0)),          # x: streamed
            pl.BlockSpec((INPUT_SIZE, HIDDEN_SIZE), lambda i: (0, 0)),  # W1: resident
            pl.BlockSpec((1, HIDDEN_SIZE), lambda i: (0, 0)),           # b1: resident
            pl.BlockSpec((HIDDEN_SIZE, OUTPUT_SIZE), lambda i: (0, 0)), # W2: resident
            pl.BlockSpec((1, OUTPUT_SIZE), lambda i: (0, 0)),           # b2: resident
        ],
        out_specs=pl.BlockSpec((tb, OUTPUT_SIZE), lambda i: (i, 0)),
        compiler_params=pltpu.CompilerParams(
            # Shard batch tiles across TensorCores (v7x megacore).
            dimension_semantics=("parallel",),
            # Covers double-buffered f32 x tiles at tb=2048 (~13 MiB) plus
            # in-kernel temporaries on all generations (v5e default is 16 MiB;
            # stays under v7x's 64 MiB physical per-TC VMEM).
            vmem_limit_bytes=48 * 1024 * 1024,
        ),
        cost_estimate=cost,
    )(x_p, w1_r, b1_r, w2_r, b2_r)

    # Drop batch padding rows (no column padding to strip anymore).
    out = out if b_pad == B else out[:B]
    return out.astype(out_dtype)


def init_params(key):
    # Mimics PyTorch nn.Linear default init: U[-1/sqrt(fan_in), 1/sqrt(fan_in)]
    k1, k2, k3, k4 = jax.random.split(key, 4)
    bound1 = 1.0 / (INPUT_SIZE ** 0.5)
    bound2 = 1.0 / (HIDDEN_SIZE ** 0.5)
    w1 = jax.random.uniform(k1, (INPUT_SIZE, HIDDEN_SIZE), jnp.float32, -bound1, bound1)
    b1 = jax.random.uniform(k2, (1, HIDDEN_SIZE), jnp.float32, -bound1, bound1)
    w2 = jax.random.uniform(k3, (HIDDEN_SIZE, OUTPUT_SIZE), jnp.float32, -bound2, bound2)
    b2 = jax.random.uniform(k4, (1, OUTPUT_SIZE), jnp.float32, -bound2, bound2)
    return w1, b1, w2, b2


if __name__ == "__main__":
    key = jax.random.PRNGKey(0)
    k_x, k_p = jax.random.split(key)

    batch = 8
    x = jax.random.normal(k_x, (batch, INPUT_SIZE), jnp.float32)
    w1, b1, w2, b2 = init_params(k_p)

    out = feedforward_nn(x, w1, b1, w2, b2)
    out = jax.block_until_ready(out)

    # Reference in plain JAX (f32).  fc1 uses bf16 operands with f32
    # accumulation, so compare with a tolerance covering bf16 rounding.
    ref = jnp.maximum(x @ w1 + b1, 0.0) @ w2 + b2
    assert out.shape == (batch, OUTPUT_SIZE)
    assert jnp.allclose(out, ref, atol=2e-2, rtol=2e-2), (
        f"max abs err {jnp.max(jnp.abs(out - ref))}")

    print("KERNEL_OK")
</pallas_src>

<mosaic_0001>
module attributes {stable_mosaic.version = 11 : i64} {
  func.func @mlp_kernel(%arg0: i32, %arg1: memref<128x784xf32, #tpu.memory_space<vmem>>, %arg2: memref<784x128xbf16, #tpu.memory_space<vmem>>, %arg3: memref<1x128xf32, #tpu.memory_space<vmem>>, %arg4: memref<128x10xf32, #tpu.memory_space<vmem>>, %arg5: memref<1x10xf32, #tpu.memory_space<vmem>>, %arg6: memref<128x10xf32, #tpu.memory_space<vmem>>) attributes {dimension_semantics = [#tpu.dimension_semantics<parallel>], iteration_bounds = array<i64: 1>, scalar_prefetch = 0 : i64, scratch_operands = 0 : i64, tpu.core_type = #tpu.core_type<tc>, window_params = [{transform_indices = @transform_0, window_bounds = array<i64: 128, 784>}, {pipeline_mode = #tpu.pipeline_mode<synchronous>, transform_indices = @transform_1, window_bounds = array<i64: 784, 128>}, {pipeline_mode = #tpu.pipeline_mode<synchronous>, transform_indices = @transform_2, window_bounds = array<i64: 1, 128>}, {pipeline_mode = #tpu.pipeline_mode<synchronous>, transform_indices = @transform_3, window_bounds = array<i64: 128, 10>}, {pipeline_mode = #tpu.pipeline_mode<synchronous>, transform_indices = @transform_4, window_bounds = array<i64: 1, 10>}, {transform_indices = @transform_5, window_bounds = array<i64: 128, 10>}]} {
    %c0 = arith.constant 0 : index
    %c0_0 = arith.constant 0 : index
    %0 = vector.load %arg1[%c0, %c0_0] : memref<128x784xf32, #tpu.memory_space<vmem>>, vector<128x784xf32>
    %1 = arith.truncf %0 : vector<128x784xf32> to vector<128x784xbf16>
    %c0_1 = arith.constant 0 : index
    %c0_2 = arith.constant 0 : index
    %2 = vector.load %arg2[%c0_1, %c0_2] : memref<784x128xbf16, #tpu.memory_space<vmem>>, vector<784x128xbf16>
    %cst = arith.constant dense<0.000000e+00> : vector<128x128xf32>
    %3 = tpu.matmul %1, %2, %cst {dimension_numbers = #tpu.dot_dimension_numbers<[1], [0], [0], [1], [0, 0, 1, 1], [], []>} : vector<128x784xbf16>, vector<784x128xbf16>, vector<128x128xf32> -> vector<128x128xf32>
    %c0_3 = arith.constant 0 : index
    %c0_4 = arith.constant 0 : index
    %4 = vector.load %arg3[%c0_3, %c0_4] : memref<1x128xf32, #tpu.memory_space<vmem>>, vector<1x128xf32>
    %5 = vector.broadcast %4 : vector<1x128xf32> to vector<128x128xf32>
    %6 = arith.addf %3, %5 : vector<128x128xf32>
    %cst_5 = arith.constant 0.000000e+00 : f32
    %7 = vector.broadcast %cst_5 : f32 to vector<128x128xf32>
    %8 = arith.maximumf %6, %7 : vector<128x128xf32>
    %c0_6 = arith.constant 0 : index
    %c0_7 = arith.constant 0 : index
    %9 = vector.load %arg4[%c0_6, %c0_7] : memref<128x10xf32, #tpu.memory_space<vmem>>, vector<128x10xf32>
    %cst_8 = arith.constant dense<0.000000e+00> : vector<128x10xf32>
    %10 = tpu.matmul %8, %9, %cst_8 {dimension_numbers = #tpu.dot_dimension_numbers<[1], [0], [0], [1], [0, 0, 1, 1], [], []>} : vector<128x128xf32>, vector<128x10xf32>, vector<128x10xf32> -> vector<128x10xf32>
    %c0_9 = arith.constant 0 : index
    %c0_10 = arith.constant 0 : index
    %11 = vector.load %arg5[%c0_9, %c0_10] : memref<1x10xf32, #tpu.memory_space<vmem>>, vector<1x10xf32>
    %12 = vector.broadcast %11 : vector<1x10xf32> to vector<128x10xf32>
    %13 = arith.addf %10, %12 : vector<128x10xf32>
    %c0_11 = arith.constant 0 : index
    %c0_12 = arith.constant 0 : index
    %14 = vector.load %arg6[%c0_11, %c0_12] : memref<128x10xf32, #tpu.memory_space<vmem>>, vector<128x10xf32>
    tpu.vector_store %arg6[%c0_11, %c0_12], %13 {strides = array<i32>} : memref<128x10xf32, #tpu.memory_space<vmem>>, vector<128x10xf32>,
    return
  }
  func.func @transform_0(%arg0: i32) -> (i32, i32) {
    %c0_i32 = arith.constant 0 : i32
    %c0_i32_0 = arith.constant 0 : i32
    return %arg0, %c0_i32 : i32, i32
  }
  func.func @transform_1(%arg0: i32) -> (i32, i32) {
    %c0_i32 = arith.constant 0 : i32
    %c0_i32_0 = arith.constant 0 : i32
    %c0_i32_1 = arith.constant 0 : i32
    return %c0_i32, %c0_i32_0 : i32, i32
  }
  func.func @transform_2(%arg0: i32) -> (i32, i32) {
    %c0_i32 = arith.constant 0 : i32
    %c0_i32_0 = arith.constant 0 : i32
    %c0_i32_1 = arith.constant 0 : i32
    return %c0_i32, %c0_i32_0 : i32, i32
  }
  func.func @transform_3(%arg0: i32) -> (i32, i32) {
    %c0_i32 = arith.constant 0 : i32
    %c0_i32_0 = arith.constant 0 : i32
    %c0_i32_1 = arith.constant 0 : i32
    return %c0_i32, %c0_i32_0 : i32, i32
  }
  func.func @transform_4(%arg0: i32) -> (i32, i32) {
    %c0_i32 = arith.constant 0 : i32
    %c0_i32_0 = arith.constant 0 : i32
    %c0_i32_1 = arith.constant 0 : i32
    return %c0_i32, %c0_i32_0 : i32, i32
  }
  func.func @transform_5(%arg0: i32) -> (i32, i32) {
    %c0_i32 = arith.constant 0 : i32
    %c0_i32_0 = arith.constant 0 : i32
    return %arg0, %c0_i32 : i32, i32
  }
}

</mosaic_0001>

<bundles_post_ra>
// kernel: tpu_custom_call.1
= control target key start
LH: loop header
LB: loop body
LE: loop exit
PB: predicated region body
PF: predicated region fallthrough
CT: control target
= control target key end

     0   :  { %vm588_vm0 = vcmask 130048   ;;  %vm1185_vm1 = vcmask 80896   ;;  %s2361_s1 = inlined_call_operand.vmem [shape: bf16[784,128], index: 1, kind: input, shape index: {}]   ;;  %s2362_s0 = inlined_call_operand.vmem [shape: f32[128,784], index: 0, kind: input, shape index: {}]   ;;  %s2363_s3 = inlined_call_operand.vmem [shape: f32[128,10], index: 3, kind: input, shape index: {}]   ;;  %s2364_s2 = inlined_call_operand.vmem [shape: f32[1,128], index: 2, kind: input, shape index: {}]   ;;  %s2365_s4 = inlined_call_operand.vmem [shape: f32[1,10], index: 4, kind: input, shape index: {}]   ;;  %s2366_s5 = inlined_call_operand.vmem [shape: f32[128,10], index: 5, kind: output, shape index: {}]  }
   0x1   :  { %v1604_v0 = vld [vmem:[%s2361_s1 + $0x40] sm:$0xff]   ;;  %v1608_v4 = vld [vmem:[%s2361_s1 + $0x48] sm:$0xff]   ;;  %v1612_v8 = vld [vmem:[%s2361_s1 + $0x50] sm:$0xff]  }
   0x2   :  { %v1605_v1 = vld [vmem:[%s2361_s1] sm:$0xff]   ;;  %1265 = vmatprep.subr.bf16.mxu0 %v1604_v0  ;;  %v1609_v5 = vld [vmem:[%s2361_s1 + $0x8] sm:$0xff]   ;;  %v1613_v9 = vld [vmem:[%s2361_s1 + $0x10] sm:$0xff]  }
   0x3   :  { %v1606_v2 = vld [vmem:[%s2361_s1 + $0xc0] sm:$0xff]   ;;  %1266 = vmatpush3.bf16.msra.mxu0 %v1605_v1  ;;  %v1610_v6 = vld [vmem:[%s2361_s1 + $0xc8] sm:$0xff]   ;;  %v1614_v10 = vld [vmem:[%s2361_s1 + $0xd0] sm:$0xff]  }
   0x4   :  { %v1607_v3 = vld [vmem:[%s2361_s1 + $0x80] sm:$0xff]   ;;  %1329 = vmatprep.subr.bf16.mxu1 %v1606_v2  ;;  %1267 = vmatprep.subr.bf16.mxu0 %v1608_v4  ;;  %v1611_v7 = vld [vmem:[%s2361_s1 + $0x88] sm:$0xff]   ;;  %v1615_v11 = vld [vmem:[%s2361_s1 + $0x90] sm:$0xff]  }
   0x5   :  { %1330 = vmatpush3.bf16.msra.mxu1 %v1607_v3  ;;  %v1616_v12 = vld [vmem:[%s2361_s1 + $0x58] sm:$0xff]   ;;  %v1620_v16 = vld [vmem:[%s2361_s1 + $0x60] sm:$0xff]   ;;  %v1624_v20 = vld [vmem:[%s2361_s1 + $0x68] sm:$0xff]  }
   0x6   :  { %1331 = vmatprep.subr.bf16.mxu1 %v1610_v6  ;;  %v1617_v13 = vld [vmem:[%s2361_s1 + $0x18] sm:$0xff]   ;;  %v1621_v17 = vld [vmem:[%s2361_s1 + $0x20] sm:$0xff]   ;;  %v1625_v21 = vld [vmem:[%s2361_s1 + $0x28] sm:$0xff]  }
   0x7   :  { %1268 = vmatpush3.bf16.msra.mxu0 %v1609_v5  ;;  %v1618_v14 = vld [vmem:[%s2361_s1 + $0xd8] sm:$0xff]   ;;  %v1622_v18 = vld [vmem:[%s2361_s1 + $0xe0] sm:$0xff]   ;;  %v1626_v22 = vld [vmem:[%s2361_s1 + $0xe8] sm:$0xff]  }
   0x8   :  { %1269 = vmatprep.subr.bf16.mxu0 %v1612_v8  ;;  %v1619_v15 = vld [vmem:[%s2361_s1 + $0x98] sm:$0xff]   ;;  %v1623_v19 = vld [vmem:[%s2361_s1 + $0xa0] sm:$0xff]   ;;  %v1627_v23 = vld [vmem:[%s2361_s1 + $0xa8] sm:$0xff]  }
   0x9   :  { %1332 = vmatpush3.bf16.msra.mxu1 %v1611_v7  ;;  %v1628_v24 = vld [vmem:[%s2361_s1 + $0x70] sm:$0xff]   ;;  %v1632_v28 = vld [vmem:[%s2361_s1 + $0x78] sm:$0xff]   ;;  %v22_v31 = vld [vmem:[%s2362_s0 + $0x8] sm:$0xff] }
   0xa   :  { %1333 = vmatprep.subr.bf16.mxu1 %v1614_v10  ;;  %v1629_v25 = vld [vmem:[%s2361_s1 + $0x30] sm:$0xff]   ;;  %v1633_v29 = vld [vmem:[%s2361_s1 + $0x38] sm:$0xff]   ;;  %v29_v32 = vld [vmem:[%s2362_s0 + $0x40] sm:$0xff] }
   0xb   :  { %1270 = vmatpush3.bf16.msra.mxu0 %v1613_v9  ;;  %v1630_v26 = vld [vmem:[%s2361_s1 + $0xf0] sm:$0xff]   ;;  %v1634_v30 = vld [vmem:[%s2361_s1 + $0xf8] sm:$0xff]   ;;  %v134_v33 = vpack.c.bf16 %v29_v32, %v22_v31  ;;  %v21_v35 = vld [vmem:[%s2362_s0] sm:$0xff] }
   0xc   :  { %1271 = vmatprep.subr.bf16.mxu0 %v1616_v12  ;;  %v1631_v27 = vld [vmem:[%s2361_s1 + $0xb0] sm:$0xff]   ;;  %v1635_v34 = vld [vmem:[%s2361_s1 + $0xb8] sm:$0xff]   ;;  %v1636_v38 = vld [vmem:[%s2361_s1 + $0x140] sm:$0xff]  }
   0xd   :  { %1334 = vmatpush3.bf16.msra.mxu1 %v1615_v11  ;;  %v28_v36 = vld [vmem:[%s2362_s0 + $0x38] sm:$0xff]  ;;  %645 = vmatprep.mubr.bf16.mxu0 %v134_v33  ;;  %v31_v40 = vld [vmem:[%s2362_s0 + $0x50] sm:$0xff]  ;;  %v1637_v42 = vld [vmem:[%s2361_s1 + $0x100] sm:$0xff]  }
   0xe   :  { %1335 = vmatprep.subr.bf16.mxu1 %v1618_v14  ;;  %v133_v37 = vpack.c.bf16 %v28_v36, %v21_v35  ;;  %v24_v39 = vld [vmem:[%s2362_s0 + $0x18] sm:$0xff]  ;;  %v23_v43 = vld [vmem:[%s2362_s0 + $0x10] sm:$0xff]  ;;  %v30_v44 = vld [vmem:[%s2362_s0 + $0x48] sm:$0xff] }
   0xf   :  { %1272 = vmatpush3.bf16.msra.mxu0 %v1617_v13  ;;  %v136_v41 = vpack.c.bf16 %v31_v40, %v24_v39  ;;  %v36_v45 = vld [vmem:[%s2362_s0 + $0x78] sm:$0xff]  ;;  %v135_v46 = vpack.c.bf16 %v30_v44, %v23_v43  ;;  %v43_v47 = vld [vmem:[%s2362_s0 + $0xb0] sm:$0xff]  ;;  %v42_v49 = vld [vmem:[%s2362_s0 + $0xa8] sm:$0xff] }
  0x10   :  { %1273 = vmatprep.subr.bf16.mxu0 %v1620_v16  ;;  %v35_v48 = vld [vmem:[%s2362_s0 + $0x70] sm:$0xff]  ;;  %v141_v50 = vpack.c.bf16 %v43_v47, %v36_v45  ;;  %v1638_v51 = vld [vmem:[%s2361_s1 + $0x148] sm:$0xff]   ;;  %v45_v53 = vld [vmem:[%s2362_s0 + $0xc0] sm:$0xff] }
  0x11   :  { %1336 = vmatpush3.bf16.msra.mxu1 %v1619_v15  ;;  %742 = vmatprep.mubr.bf16.mxu1 %v136_v41  ;;  %v38_v52 = vld [vmem:[%s2362_s0 + $0x88] sm:$0xff]  ;;  %v140_v54 = vpack.c.bf16 %v42_v49, %v35_v48  ;;  %v37_v57 = vld [vmem:[%s2362_s0 + $0x80] sm:$0xff]  ;;  %v44_v58 = vld [vmem:[%s2362_s0 + $0xb8] sm:$0xff] }
  0x12   :  { %1337 = vmatprep.subr.bf16.mxu1 %v1622_v18  ;;  %v143_v55 = vpack.c.bf16 %v45_v53, %v38_v52  ;;  %v1639_v56 = vld [vmem:[%s2361_s1 + $0x108] sm:$0xff]   ;;  %v57_v60 = vld [vmem:[%s2362_s0 + $0x120] sm:$0xff]  ;;  %v142_v62 = vpack.c.bf16 %v44_v58, %v37_v57  ;;  %v1640_v63 = vld [vmem:[%s2361_s1 + $0x150] sm:$0xff]  }
  0x13   :  { %1274 = vmatpush3.bf16.msra.mxu0 %v1621_v17  ;;  %v50_v59 = vld [vmem:[%s2362_s0 + $0xe8] sm:$0xff]  ;;  %v52_v0 = vld [vmem:[%s2362_s0 + $0xf8] sm:$0xff]  ;;  %v59_v1 = vld [vmem:[%s2362_s0 + $0x130] sm:$0xff] }
  0x14   :  { %1275 = vmatprep.subr.bf16.mxu0 %v1624_v20  ;;  %v148_v61 = vpack.c.bf16 %v57_v60, %v50_v59  ;;  %v49_v2 = vld [vmem:[%s2362_s0 + $0xe0] sm:$0xff]  ;;  %v56_v3 = vld [vmem:[%s2362_s0 + $0x118] sm:$0xff]  ;;  %v150_v4 = vpack.c.bf16 %v59_v1, %v52_v0  ;;  %v1641_v5 = vld [vmem:[%s2361_s1 + $0x110] sm:$0xff]  }
  0x15   :  { %1338 = vmatpush3.bf16.msra.mxu1 %v1623_v19  ;;  %v51_v6 = vld [vmem:[%s2362_s0 + $0xf0] sm:$0xff]  ;;  %v64_v7 = vld [vmem:[%s2362_s0 + $0x158] sm:$0xff]  ;;  %v58_v9 = vld [vmem:[%s2362_s0 + $0x128] sm:$0xff]  ;;  %v147_v10 = vpack.c.bf16 %v56_v3, %v49_v2 }
  0x16   :  { %1339 = vmatprep.subr.bf16.mxu1 %v1626_v22  ;;  %v71_v8 = vld [vmem:[%s2362_s0 + $0x190] sm:$0xff]  ;;  %v1642_v11 = vld [vmem:[%s2361_s1 + $0x158] sm:$0xff]   ;;  %v66_v12 = vld [vmem:[%s2362_s0 + $0x168] sm:$0xff]  ;;  %v149_v16 = vpack.c.bf16 %v58_v9, %v51_v6 }
  0x17   :  { %1276 = vmatpush3.bf16.msra.mxu0 %v1625_v21  ;;  %v73_v13 = vld [vmem:[%s2362_s0 + $0x1a0] sm:$0xff]  ;;  %v155_v14 = vpack.c.bf16 %v71_v8, %v64_v7  ;;  %v1643_v15 = vld [vmem:[%s2361_s1 + $0x118] sm:$0xff]   ;;  %v63_v17 = vld [vmem:[%s2362_s0 + $0x150] sm:$0xff] }
  0x18   :  { %1277 = vmatprep.subr.bf16.mxu0 %v1628_v24  ;;  %v70_v18 = vld [vmem:[%s2362_s0 + $0x188] sm:$0xff]  ;;  %v157_v19 = vpack.c.bf16 %v73_v13, %v66_v12  ;;  %v1644_v20 = vld [vmem:[%s2361_s1 + $0x160] sm:$0xff]   ;;  %v84_v36 = vld [vmem:[%s2362_s0 + $0x1f8] sm:$0xff] }
  0x19   :  { %1340 = vmatpush3.bf16.msra.mxu1 %v1627_v23  ;;  %v1645_v21 = vld [vmem:[%s2361_s1 + $0x180] sm:$0xff]   ;;  %v78_v22 = vld [vmem:[%s2362_s0 + $0x1c8] sm:$0xff]  ;;  %v79_v39 = vld [vmem:[%s2362_s0 + $0x1d0] sm:$0xff] }
  0x1a   :  { %1341 = vmatprep.subr.bf16.mxu1 %v1630_v26  ;;  %v85_v23 = vld [vmem:[%s2362_s0 + $0x200] sm:$0xff]  ;;  %v1647_v31 = vld [vmem:[%s2361_s1 + $0x168] sm:$0xff]   ;;  %v1649_v41 = vld [vmem:[%s2361_s1 + $0x170] sm:$0xff]  }
  0x1b   :  { %1278 = vmatpush3.bf16.msra.mxu0 %v1629_v25  ;;  %v1646_v24 = vld [vmem:[%s2361_s1 + $0x120] sm:$0xff]   ;;  %v154_v25 = vpack.c.bf16 %v70_v18, %v63_v17  ;;  %v86_v40 = vld [vmem:[%s2362_s0 + $0x208] sm:$0xff]  ;;  %v1650_v43 = vld [vmem:[%s2361_s1 + $0x130] sm:$0xff]  }
  0x1c   :  { %1279 = vmatprep.subr.bf16.mxu0 %v1632_v28  ;;  %v65_v26 = vld [vmem:[%s2362_s0 + $0x160] sm:$0xff]  ;;  %v162_v28 = vpack.c.bf16 %v85_v23, %v78_v22  ;;  %v94_v45 = vld [vmem:[%s2362_s0 + $0x248] sm:$0xff]  ;;  %v163_v47 = vpack.c.bf16 %v86_v40, %v79_v39  ;;  %v1651_v48 = vld [vmem:[%s2361_s1 + $0x178] sm:$0xff]  }
  0x1d   :  { %1342 = vmatpush3.bf16.msra.mxu1 %v1631_v27  ;;  %v72_v27 = vld [vmem:[%s2362_s0 + $0x198] sm:$0xff]  ;;  %v77_v35 = vld [vmem:[%s2362_s0 + $0x1c0] sm:$0xff]  ;;  %v91_v49 = vld [vmem:[%s2362_s0 + $0x230] sm:$0xff] }
  0x1e   :  { %1343 = vmatprep.subr.bf16.mxu1 %v1634_v30  ;;  %v87_v30 = vld [vmem:[%s2362_s0 + $0x210] sm:$0xff]  ;;  %v156_v32 = vpack.c.bf16 %v72_v27, %v65_v26  ;;  %v1652_v52 = vld [vmem:[%s2361_s1 + $0x138] sm:$0xff]   ;;  %v106_v53 = vld [vmem:[%s2362_s0 + $0x2a8] sm:$0xff] }
  0x1f   :  { %1280 = vmatpush3.bf16.msra.mxu0 %v1633_v29  ;;  %v80_v29 = vld [vmem:[%s2362_s0 + $0x1d8] sm:$0xff]  ;;  %v115_v60 = vld [vmem:[%s2362_s0 + $0x2f0] sm:$0xff]  ;;  %v122_v7 = vld [vmem:[%s2362_s0 + $0x328] sm:$0xff] }
  0x20   :  { %1393 = vmatprep.subr.bf16.mxu0 %v1636_v38  ;;  %v164_v33 = vpack.c.bf16 %v87_v30, %v80_v29  ;;  %v99_v38 = vld [vmem:[%s2362_s0 + $0x270] sm:$0xff]  ;;  %v100_v57 = vld [vmem:[%s2362_s0 + $0x278] sm:$0xff]  ;;  %v129_v8 = vld [vmem:[%s2362_s0 + $0x360] sm:$0xff] }
  0x21   :  { %1344 = vmatpush3.bf16.msra.mxu1 %v1635_v34  ;;  %v1648_v34 = vld [vmem:[%s2361_s1 + $0x128] sm:$0xff]   ;;  %v108_v59 = vld [vmem:[%s2362_s0 + $0x2b8] sm:$0xff]  ;;  %v127_v2 = vld [vmem:[%s2362_s0 + $0x350] sm:$0xff] }
  0x22   :  { %646 = vmatmul.mubr.bf16.vlgmr.msra.gmra.mrb[0].mxu0 %v133_v37  ;;  %1498 = vmatprep.subr.bf16.mxu1 %v1645_v21  ;;  %v92_v37 = vld [vmem:[%s2362_s0 + $0x238] sm:$0xff]  ;;  %v126_v12 = vld [vmem:[%s2362_s0 + $0x348] sm:$0xff]  ;;  %v25_v23 = vld [vmem:[%s2362_s0 + $0x20] sm:$0xff] }
  0x23   :  { %1394 = vmatpush3.bf16.msra.mxu0 %v1637_v42  ;;  %653 = vmatprep.mubr.bf16.mxu0 %v141_v50  ;;  %v161_v42 = vpack.c.bf16 %v84_v36, %v77_v35  ;;  %v169_v44 = vpack.c.bf16 %v99_v38, %v92_v37  ;;  %v112_v0 = vld [vmem:[%s2362_s0 + $0x2d8] sm:$0xff]  ;;  %v26_v13 = vld [vmem:[%s2362_s0 + $0x28] sm:$0xff]  ;;  %v47_v26 = vld [vmem:[%s2362_s0 + $0xd0] sm:$0xff] }
  0x24   :  { %743 = vmatmul.mubr.bf16.vlgmr.msra.gmra.mrb[0].mxu1 %v135_v46  ;;  %1395 = vmatprep.subr.bf16.mxu0 %v1638_v51  ;;  %v101_v46 = vld [vmem:[%s2362_s0 + $0x280] sm:$0xff]  ;;  %v98_v51 = vld [vmem:[%s2362_s0 + $0x268] sm:$0xff]  ;;  %v120_v1 = vld [vmem:[%s2362_s0 + $0x318] sm:$0xff] }
  0x25   :  { %750 = vmatprep.mubr.bf16.mxu1 %v143_v55  ;;  %1499 = vmatpush3.bf16.msra.mxu1 %v1645_v21  ;;  %v171_v50 = vpack.c.bf16 %v101_v46, %v94_v45  ;;  %v168_v55 = vpack.c.bf16 %v98_v51, %v91_v49  ;;  %v183_v6 = vpack.c.bf16 %v127_v2, %v120_v1  ;;  %v128_v17 = vld [vmem:[%s2362_s0 + $0x358] sm:$0xff]  ;;  %v39_v35 = vld [vmem:[%s2362_s0 + $0x90] sm:$0xff]  ;;  %v46_v36 = vld [vmem:[%s2362_s0 + $0xc8] sm:$0xff] }
  0x26   :  { %v48_v29 = vld [vmem:[%s2362_s0 + $0xd8] sm:$0xff]  ;;  %v54_v37 = vld [vmem:[%s2362_s0 + $0x108] sm:$0xff]  ;;  %v61_v38 = vld [vmem:[%s2362_s0 + $0x140] sm:$0xff]  ;;  %v144_v39 = vpack.c.bf16 %v46_v36, %v39_v35 }
  0x27   :  { %1396 = vmatpush3.bf16.msra.mxu0 %v1639_v56  ;;  %v93_v56 = vld [vmem:[%s2362_s0 + $0x240] sm:$0xff]  ;;  %v68_v49 = vld [vmem:[%s2362_s0 + $0x178] sm:$0xff] }
  0x28   :  { %1397 = vmatprep.subr.bf16.mxu0 %v1640_v63  ;;  %v105_v63 = vld [vmem:[%s2362_s0 + $0x2a0] sm:$0xff]  ;;  %v132_v1 = vld [vmem:[%s2362_s0 + $0x378] sm:$0xff] }
  0x29   :  { %v175_v3 = vpack.c.bf16 %v112_v0, %v105_v63  ;;  %v69_v40 = vld [vmem:[%s2362_s0 + $0x180] sm:$0xff]  ;;  %v1024_v35 = vld [vmem:[%s2363_s3 + $0x38] sm:$0xff] }
  0x2a   :  { %654 = vmatmul.mubr.bf16.gmra.mrb[4].mxu0 %v140_v54  ;;  %v113_v54 = vld [vmem:[%s2362_s0 + $0x2e0] sm:$0xff] }
  0x2b   :  { %661 = vmatprep.mubr.bf16.mxu0 %v148_v61  ;;  %1398 = vmatpush3.bf16.msra.mxu0 %v1641_v5  ;;  %v176_v58 = vpack.c.bf16 %v113_v54, %v106_v53  ;;  %v170_v61 = vpack.c.bf16 %v100_v57, %v93_v56  ;;  %v114_v5 = vld [vmem:[%s2362_s0 + $0x2e8] sm:$0xff]  ;;  %v104_v53 = vld [vmem:[%s2362_s0 + $0x298] sm:$0xff]  ;;  %v125_v0 = vld [vmem:[%s2362_s0 + $0x340] sm:$0xff] }
  0x2c   :  { %751 = vmatmul.mubr.bf16.gmra.mrb[4].mxu1 %v142_v62  ;;  %1399 = vmatprep.subr.bf16.mxu0 %v1642_v11  ;;  %v178_v62 = vpack.c.bf16 %v115_v60, %v108_v59  ;;  %v119_v11 = vld [vmem:[%s2362_s0 + $0x310] sm:$0xff]  ;;  %v118_v56 = vld [vmem:[%s2362_s0 + $0x308] sm:$0xff] }
  0x2d   :  { %758 = vmatprep.mubr.bf16.mxu1 %v150_v4  ;;  %v107_v4 = vld [vmem:[%s2362_s0 + $0x2b0] sm:$0xff]  ;;  %v74_v60 = vld [vmem:[%s2362_s0 + $0x1a8] sm:$0xff] }
  0x2e   :  { %v177_v9 = vpack.c.bf16 %v114_v5, %v107_v4  ;;  %v67_v59 = vld [vmem:[%s2362_s0 + $0x170] sm:$0xff]  ;;  %v81_v4 = vld [vmem:[%s2362_s0 + $0x1e0] sm:$0xff]  ;;  %v88_v5 = vld [vmem:[%s2362_s0 + $0x218] sm:$0xff] }
  0x2f   :  { %1400 = vmatpush3.bf16.msra.mxu0 %v1643_v15  ;;  %v182_v15 = vpack.c.bf16 %v126_v12, %v119_v11  ;;  %v158_v63 = vpack.c.bf16 %v74_v60, %v67_v59  ;;  %v102_v11 = vld [vmem:[%s2362_s0 + $0x288] sm:$0xff] }
  0x30   :  { %1401 = vmatprep.subr.bf16.mxu0 %v1644_v20  ;;  %v34_v20 = vld [vmem:[%s2362_s0 + $0x68] sm:$0xff] }
  0x31   :  { %v110_v12 = vld [vmem:[%s2362_s0 + $0x2c8] sm:$0xff] }
  0x32   :  { %662 = vmatmul.mubr.bf16.gmra.mrb[8].mxu0 %v147_v10  ;;  %v185_v10 = vpack.c.bf16 %v129_v8, %v122_v7  ;;  %v103_v7 = vld [vmem:[%s2362_s0 + $0x290] sm:$0xff]  ;;  %v165_v8 = vpack.c.bf16 %v88_v5, %v81_v4 }
  0x33   :  { %669 = vmatprep.mubr.bf16.mxu0 %v155_v14  ;;  %1402 = vmatpush3.bf16.msra.mxu0 %v1646_v24  ;;  %v33_v14 = vld [vmem:[%s2362_s0 + $0x60] sm:$0xff]  ;;  %v32_v24 = vld [vmem:[%s2362_s0 + $0x58] sm:$0xff] }
  0x34   :  { %759 = vmatmul.mubr.bf16.gmra.mrb[8].mxu1 %v149_v16  ;;  %1403 = vmatprep.subr.bf16.mxu0 %v1647_v31  ;;  %v121_v16 = vld [vmem:[%s2362_s0 + $0x320] sm:$0xff]  ;;  %v138_v18 = vpack.c.bf16 %v33_v14, %v26_v13  ;;  %v137_v27 = vpack.c.bf16 %v32_v24, %v25_v23  ;;  %v55_v31 = vld [vmem:[%s2362_s0 + $0x110] sm:$0xff]  ;;  %v130_v23 = vld [vmem:[%s2362_s0 + $0x368] sm:$0xff] }
  0x35   :  { %766 = vmatprep.mubr.bf16.mxu1 %v157_v19  ;;  %v27_v19 = vld [vmem:[%s2362_s0 + $0x30] sm:$0xff]  ;;  %v184_v21 = vpack.c.bf16 %v128_v17, %v121_v16  ;;  %v117_v13 = vld [vmem:[%s2362_s0 + $0x300] sm:$0xff]  ;;  %v116_v17 = vld [vmem:[%s2362_s0 + $0x2f8] sm:$0xff] }
  0x36   :  { %v139_v22 = vpack.c.bf16 %v34_v20, %v27_v19  ;;  %v109_v16 = vld [vmem:[%s2362_s0 + $0x2c0] sm:$0xff]  ;;  %v131_v19 = vld [vmem:[%s2362_s0 + $0x370] sm:$0xff] }
  0x37   :  { %1404 = vmatpush3.bf16.msra.mxu0 %v1648_v34  ;;  %v179_v20 = vpack.c.bf16 %v116_v17, %v109_v16 }
  0x38   :  { %1405 = vmatprep.subr.bf16.mxu0 %v1649_v41  ;;  %v76_v41 = vld [vmem:[%s2362_s0 + $0x1b8] sm:$0xff] }
  0x39   :  { %v160_v45 = vpack.c.bf16 %v76_v41, %v69_v40  ;;  %v1027_v40 = vld [vmem:[%s2363_s3 + $0x50] sm:$0xff]  ;;  %v1028_v41 = vld [vmem:[%s2363_s3 + $0x58] sm:$0xff] }
  0x3a   :  { %670 = vmatmul.mubr.bf16.gmra.mrb[12].mxu0 %v154_v25  ;;  %v40_v25 = vld [vmem:[%s2362_s0 + $0x98] sm:$0xff] }
  0x3b   :  { %677 = vmatprep.mubr.bf16.mxu0 %v162_v28  ;;  %1406 = vmatpush3.bf16.msra.mxu0 %v1650_v43  ;;  %v41_v28 = vld [vmem:[%s2362_s0 + $0xa0] sm:$0xff]  ;;  %v145_v30 = vpack.c.bf16 %v47_v26, %v40_v25  ;;  %v83_v43 = vld [vmem:[%s2362_s0 + $0x1f0] sm:$0xff]  ;;  %v1018_v26 = vld [vmem:[%s2363_s3 + $0x8] sm:$0xff] }
  0x3c   :  { %767 = vmatmul.mubr.bf16.gmra.mrb[12].mxu1 %v156_v32  ;;  %1407 = vmatprep.subr.bf16.mxu0 %v1651_v48  ;;  %v62_v32 = vld [vmem:[%s2362_s0 + $0x148] sm:$0xff]  ;;  %v60_v48 = vld [vmem:[%s2362_s0 + $0x138] sm:$0xff]  ;;  %v1017_v25 = vld [vmem:[%s2363_s3] sm:$0xff] }
  0x3d   :  { %774 = vmatprep.mubr.bf16.mxu1 %v164_v33  ;;  %v146_v33 = vpack.c.bf16 %v48_v29, %v41_v28  ;;  %v153_v34 = vpack.c.bf16 %v62_v32, %v55_v31  ;;  %v1019_v28 = vld [vmem:[%s2363_s3 + $0x10] sm:$0xff]  ;;  %v1020_v29 = vld [vmem:[%s2363_s3 + $0x18] sm:$0xff]  ;;  %v1021_v31 = vld [vmem:[%s2363_s3 + $0x20] sm:$0xff] }
  0x3e   :  { %v1022_v32 = vld [vmem:[%s2363_s3 + $0x28] sm:$0xff] }
  0x3f   :  { %1408 = vmatpush3.bf16.msra.mxu0 %v1652_v52  ;;  %v97_v52 = vld [vmem:[%s2362_s0 + $0x260] sm:$0xff] }
  0x40   :  { %v174_v57 = vpack.c.bf16 %v104_v53, %v97_v52 }
  0x42   :  { %678 = vmatmul.mubr.bf16.gmra.mrb[16].mxu0 %v161_v42  ;;  %v152_v42 = vpack.c.bf16 %v61_v38, %v54_v37  ;;  %v1025_v37 = vld [vmem:[%s2363_s3 + $0x40] sm:$0xff]  ;;  %v1026_v38 = vld [vmem:[%s2363_s3 + $0x48] sm:$0xff] }
  0x43   :  { %685 = vmatprep.mubr.bf16.mxu0 %v169_v44  ;;  %v90_v44 = vld [vmem:[%s2362_s0 + $0x228] sm:$0xff] }
  0x44   :  { %775 = vmatmul.mubr.bf16.gmra.mrb[16].mxu1 %v163_v47  ;;  %v167_v46 = vpack.c.bf16 %v90_v44, %v83_v43  ;;  %v53_v47 = vld [vmem:[%s2362_s0 + $0x100] sm:$0xff]  ;;  %v1030_v44 = vld [vmem:[%s2363_s3 + $0x68] sm:$0xff] }
  0x45   :  { %782 = vmatprep.mubr.bf16.mxu1 %v171_v50  ;;  %v75_v50 = vld [vmem:[%s2362_s0 + $0x1b0] sm:$0xff]  ;;  %v151_v51 = vpack.c.bf16 %v60_v48, %v53_v47  ;;  %v1029_v43 = vld [vmem:[%s2363_s3 + $0x60] sm:$0xff]  ;;  %v1032_v47 = vld [vmem:[%s2363_s3 + $0x78] sm:$0xff] }
  0x46   :  { %v159_v54 = vpack.c.bf16 %v75_v50, %v68_v49  ;;  %v2225_v50 = vld [vmem:[%s2364_s2] ss:$0 sm:$0xff] }
  0x4a   :  { %686 = vmatmul.mubr.bf16.gmra.mrb[20].mxu0 %v168_v55  ;;  %v111_v55 = vld [vmem:[%s2362_s0 + $0x2d0] sm:$0xff] }
  0x4b   :  { %693 = vmatprep.mubr.bf16.mxu0 %v176_v58  ;;  %v181_v58 = vpack.c.bf16 %v118_v56, %v111_v55 }
  0x4c   :  { %783 = vmatmul.mubr.bf16.gmra.mrb[20].mxu1 %v170_v61  ;;  %v82_v61 = vld [vmem:[%s2362_s0 + $0x1e8] sm:$0xff] }
  0x4d   :  { %790 = vmatprep.mubr.bf16.mxu1 %v178_v62  ;;  %v89_v62 = vld [vmem:[%s2362_s0 + $0x220] sm:$0xff] }
  0x4e   :  { %v166_v2 = vpack.c.bf16 %v89_v62, %v82_v61 }
  0x52   :  { %694 = vmatmul.mubr.bf16.gmra.mrb[24].mxu0 %v175_v3  ;;  %v188_v3 = vpack.c.bf16 %v132_v1, %v125_v0 }
  0x53   :  { %701 = vmatprep.mubr.bf16.mxu0 %v183_v6  ;;  %v96_v6 = vld [vmem:[%s2362_s0 + $0x258] sm:$0xff] }
  0x54   :  { %791 = vmatmul.mubr.bf16.gmra.mrb[24].mxu1 %v177_v9  ;;  %v173_v9 = vpack.c.bf16 %v103_v7, %v96_v6 }
  0x55   :  { %798 = vmatprep.mubr.bf16.mxu1 %v185_v10  ;;  %v95_v10 = vld [vmem:[%s2362_s0 + $0x250] sm:$0xff] }
  0x56   :  { %v172_v14 = vpack.c.bf16 %v102_v11, %v95_v10 }
  0x5a   :  { %702 = vmatmul.mubr.bf16.gmra.mrb[28].mxu0 %v182_v15  ;;  %v180_v15 = vpack.c.bf16 %v117_v13, %v110_v12 }
  0x5b   :  { %839 = vmatprep.mubr.bf16.mxu0 %v138_v18  ;;  %v124_v18 = vld [vmem:[%s2362_s0 + $0x338] sm:$0xff] }
  0x5c   :  { %799 = vmatmul.mubr.bf16.gmra.mrb[28].mxu1 %v184_v21  ;;  %v187_v21 = vpack.c.bf16 %v131_v19, %v124_v18 }
  0x5d   :  { %1500 = vmatprep.mubr.msk.bf16.mxu1 %vm588_vm0, %v139_v22  ;;  %v123_v22 = vld [vmem:[%s2362_s0 + $0x330] sm:$0xff] }
  0x5e   :  { %v186_v24 = vpack.c.bf16 %v130_v23, %v123_v22 }
  0x62   :  { %840 = vmatmul.mubr.bf16.vlgmr.msra.gmra.mrb[32].mxu0 %v137_v27  ;;  %v1572_v27 = vpack.c.bf16 %v1018_v26, %v1017_v25 }
  0x63   :  { %847 = vmatprep.mubr.bf16.mxu0 %v145_v30  ;;  %v1576_v30 = vpack.c.bf16 %v1020_v29, %v1019_v28 }
  0x64   :  { %1501 = vmatmul.mubr.msk.bf16.vlgmr.msra.gmra.mrb[32].mxu1 %vm588_vm0, %v146_v33  ;;  %1573 = vmatprep.subr.bf16.mxu1 %v1572_v27  ;;  %v1580_v33 = vpack.c.bf16 %v1022_v32, %v1021_v31 }
  0x65   :  { %1504 = vmatprep.mubr.msk.bf16.mxu1 %vm588_vm0, %v153_v34  ;;  %1575 = vmatpush3.bf16.msra.mxu1 %v1572_v27  ;;  %v1023_v34 = vld [vmem:[%s2363_s3 + $0x30] sm:$0xff] }
  0x66   :  { %1577 = vmatprep.subr.bf16.mxu1 %v1576_v30  ;;  %v1584_v36 = vpack.c.bf16 %v1024_v35, %v1023_v34 }
  0x69   :  { %1579 = vmatpush3.bf16.msra.mxu1 %v1576_v30 }
  0x6a   :  { %848 = vmatmul.mubr.bf16.gmra.mrb[36].mxu0 %v144_v39  ;;  %1581 = vmatprep.subr.bf16.mxu1 %v1580_v33  ;;  %v1588_v39 = vpack.c.bf16 %v1026_v38, %v1025_v37 }
  0x6b   :  { %855 = vmatprep.mubr.bf16.mxu0 %v152_v42  ;;  %v1592_v42 = vpack.c.bf16 %v1028_v41, %v1027_v40 }
  0x6c   :  { %1505 = vmatmul.mubr.msk.bf16.gmra.mrb[36].mxu1 %vm588_vm0, %v160_v45  ;;  %v1596_v45 = vpack.c.bf16 %v1030_v44, %v1029_v43 }
  0x6d   :  { %1508 = vmatprep.mubr.msk.bf16.mxu1 %vm588_vm0, %v167_v46  ;;  %1583 = vmatpush3.bf16.msra.mxu1 %v1580_v33  ;;  %v1031_v46 = vld [vmem:[%s2363_s3 + $0x70] sm:$0xff] }
  0x6e   :  { %1585 = vmatprep.subr.bf16.mxu1 %v1584_v36  ;;  %v1600_v48 = vpack.c.bf16 %v1032_v47, %v1031_v46 }
  0x71   :  { %1587 = vmatpush3.bf16.msra.mxu1 %v1584_v36 }
  0x72   :  { %856 = vmatmul.mubr.bf16.gmra.mrb[40].mxu0 %v151_v51  ;;  %1589 = vmatprep.subr.bf16.mxu1 %v1588_v39 }
  0x73   :  { %863 = vmatprep.mubr.bf16.mxu0 %v159_v54 }
  0x74   :  { %1509 = vmatmul.mubr.msk.bf16.gmra.mrb[40].mxu1 %vm588_vm0, %v174_v57 }
  0x75   :  { %1512 = vmatprep.mubr.msk.bf16.mxu1 %vm588_vm0, %v181_v58  ;;  %1591 = vmatpush3.bf16.msra.mxu1 %v1588_v39 }
  0x76   :  { %1593 = vmatprep.subr.bf16.mxu1 %v1592_v42 }
  0x79   :  { %1595 = vmatpush3.bf16.msra.mxu1 %v1592_v42 }
  0x7a   :  { %864 = vmatmul.mubr.bf16.gmra.mrb[44].mxu0 %v158_v63  ;;  %1597 = vmatprep.subr.bf16.mxu1 %v1596_v45 }
  0x7b   :  { %871 = vmatprep.mubr.bf16.mxu0 %v166_v2 }
  0x7c   :  { %1513 = vmatmul.mubr.msk.bf16.gmra.mrb[44].mxu1 %vm588_vm0, %v188_v3 }
  0x7d   :  { %1599 = vmatpush3.bf16.msra.mxu1 %v1596_v45 }
  0x7e   :  { %1601 = vmatprep.subr.bf16.mxu1 %v1600_v48 }
  0x81   :  { %1603 = vmatpush3.bf16.msra.mxu1 %v1600_v48 }
  0x82   :  { %872 = vmatmul.mubr.bf16.gmra.mrb[48].mxu0 %v165_v8 }
  0x83   :  { %879 = vmatprep.mubr.bf16.mxu0 %v173_v9 }
  0x8a   :  { %880 = vmatmul.mubr.bf16.gmra.mrb[52].mxu0 %v172_v14 }
  0x8b   :  { %887 = vmatprep.mubr.bf16.mxu0 %v180_v15 }
  0x92   :  { %888 = vmatmul.mubr.bf16.gmra.mrb[56].mxu0 %v179_v20 }
  0x93   :  { %895 = vmatprep.mubr.bf16.mxu0 %v187_v21 }
  0x9a   :  { %896 = vmatmul.mubr.bf16.gmra.mrb[60].mxu0 %v186_v24 }
  0xf5   :  { %v1281_v49 = vpop.f32.mrb[0].mxu0 }
  0xf6   :  { %v1282_v51 = vpop.f32.mrb[1].mxu0 }
  0xf7   :  { %v1283_v52 = vadd.f32 %v1282_v51, %v1281_v49  ;;  %v1284_v53 = vpop.f32.mrb[2].mxu0  ;;  %v1345_v54 = vpop.f32.mrb[0].mxu1 }
  0xf8   :  { %v1285_v55 = vpop.f32.mrb[3].mxu0  ;;  %v1346_v58 = vpop.f32.mrb[1].mxu1 }
  0xf9   :  { %v648_v56 = vadd.f32 %v1283_v52, %v2225_v50  ;;  %v1286_v57 = vadd.f32 %v1285_v55, %v1284_v53  ;;  %v1347_v59 = vadd.f32 %v1346_v58, %v1345_v54  ;;  %v1348_v60 = vpop.f32.mrb[2].mxu1 }
  0xfa   :  { %v1349_v62 = vpop.f32.mrb[3].mxu1 }
  0xfb   :  { %v651_v61 = vadd.f32 %v1286_v57, %v2225_v50  ;;  %v2229_v63 = vadd.f32 %v1347_v59, %v648_v56  ;;  %v1350_v0 = vadd.f32 %v1349_v62, %v1348_v60 }
  0xfd   :  { %v1287_v1 = vpop.f32.mrb[4].mxu0  ;;  %v2231_v2 = vadd.f32 %v1350_v0, %v651_v61 }
  0xfe   :  { %v1288_v3 = vpop.f32.mrb[5].mxu0 }
  0xff   :  { %v1289_v4 = vadd.f32 %v1288_v3, %v1287_v1  ;;  %v1290_v5 = vpop.f32.mrb[6].mxu0  ;;  %v1351_v6 = vpop.f32.mrb[4].mxu1 }
 0x100   :  { %v1291_v7 = vpop.f32.mrb[7].mxu0  ;;  %v1352_v10 = vpop.f32.mrb[5].mxu1 }
 0x101   :  { %v656_v8 = vadd.f32 %v1289_v4, %v2225_v50  ;;  %v1292_v9 = vadd.f32 %v1291_v7, %v1290_v5  ;;  %v1353_v11 = vadd.f32 %v1352_v10, %v1351_v6  ;;  %v1354_v12 = vpop.f32.mrb[6].mxu1 }
 0x102   :  { %v1355_v14 = vpop.f32.mrb[7].mxu1 }
 0x103   :  { %v659_v13 = vadd.f32 %v1292_v9, %v2225_v50  ;;  %v2235_v15 = vadd.f32 %v1353_v11, %v656_v8  ;;  %v1356_v16 = vadd.f32 %v1355_v14, %v1354_v12 }
 0x105   :  { %v1293_v17 = vpop.f32.mrb[8].mxu0  ;;  %v2237_v18 = vadd.f32 %v1356_v16, %v659_v13 }
 0x106   :  { %v1294_v19 = vpop.f32.mrb[9].mxu0 }
 0x107   :  { %v1295_v20 = vadd.f32 %v1294_v19, %v1293_v17  ;;  %v1296_v21 = vpop.f32.mrb[10].mxu0  ;;  %v1357_v22 = vpop.f32.mrb[8].mxu1 }
 0x108   :  { %v1297_v23 = vpop.f32.mrb[11].mxu0  ;;  %v1358_v26 = vpop.f32.mrb[9].mxu1 }
 0x109   :  { %v664_v24 = vadd.f32 %v1295_v20, %v2225_v50  ;;  %v1298_v25 = vadd.f32 %v1297_v23, %v1296_v21  ;;  %v1359_v27 = vadd.f32 %v1358_v26, %v1357_v22  ;;  %v1360_v28 = vpop.f32.mrb[10].mxu1 }
 0x10a   :  { %v1361_v30 = vpop.f32.mrb[11].mxu1 }
 0x10b   :  { %v667_v29 = vadd.f32 %v1298_v25, %v2225_v50  ;;  %v2241_v31 = vadd.f32 %v1359_v27, %v664_v24  ;;  %v1362_v32 = vadd.f32 %v1361_v30, %v1360_v28 }
 0x10d   :  { %v1299_v33 = vpop.f32.mrb[12].mxu0  ;;  %v2243_v34 = vadd.f32 %v1362_v32, %v667_v29 }
 0x10e   :  { %v1300_v35 = vpop.f32.mrb[13].mxu0 }
 0x10f   :  { %v1301_v36 = vadd.f32 %v1300_v35, %v1299_v33  ;;  %v1302_v37 = vpop.f32.mrb[14].mxu0  ;;  %v1363_v38 = vpop.f32.mrb[12].mxu1 }
 0x110   :  { %v1303_v39 = vpop.f32.mrb[15].mxu0  ;;  %v1364_v42 = vpop.f32.mrb[13].mxu1 }
 0x111   :  { %v672_v40 = vadd.f32 %v1301_v36, %v2225_v50  ;;  %v1304_v41 = vadd.f32 %v1303_v39, %v1302_v37  ;;  %v1365_v43 = vadd.f32 %v1364_v42, %v1363_v38  ;;  %v1366_v44 = vpop.f32.mrb[14].mxu1 }
 0x112   :  { %v1367_v46 = vpop.f32.mrb[15].mxu1 }
 0x113   :  { %v675_v45 = vadd.f32 %v1304_v41, %v2225_v50  ;;  %v2247_v47 = vadd.f32 %v1365_v43, %v672_v40  ;;  %v1368_v48 = vadd.f32 %v1367_v46, %v1366_v44 }
 0x115   :  { %v1305_v49 = vpop.f32.mrb[16].mxu0  ;;  %v2249_v51 = vadd.f32 %v1368_v48, %v675_v45 }
 0x116   :  { %v1306_v52 = vpop.f32.mrb[17].mxu0 }
 0x117   :  { %v1307_v53 = vadd.f32 %v1306_v52, %v1305_v49  ;;  %v1308_v54 = vpop.f32.mrb[18].mxu0  ;;  %v1369_v55 = vpop.f32.mrb[16].mxu1 }
 0x118   :  { %v1309_v56 = vpop.f32.mrb[19].mxu0  ;;  %v1370_v59 = vpop.f32.mrb[17].mxu1 }
 0x119   :  { %v680_v57 = vadd.f32 %v1307_v53, %v2225_v50  ;;  %v1310_v58 = vadd.f32 %v1309_v56, %v1308_v54  ;;  %v1371_v60 = vadd.f32 %v1370_v59, %v1369_v55  ;;  %v1372_v61 = vpop.f32.mrb[18].mxu1 }
 0x11a   :  { %v1373_v0 = vpop.f32.mrb[19].mxu1 }
 0x11b   :  { %v683_v62 = vadd.f32 %v1310_v58, %v2225_v50  ;;  %v2253_v1 = vadd.f32 %v1371_v60, %v680_v57  ;;  %v1374_v3 = vadd.f32 %v1373_v0, %v1372_v61 }
 0x11d   :  { %v1311_v4 = vpop.f32.mrb[20].mxu0  ;;  %v2255_v5 = vadd.f32 %v1374_v3, %v683_v62 }
 0x11e   :  { %v1312_v6 = vpop.f32.mrb[21].mxu0 }
 0x11f   :  { %v1313_v7 = vadd.f32 %v1312_v6, %v1311_v4  ;;  %v1314_v8 = vpop.f32.mrb[22].mxu0  ;;  %v1375_v9 = vpop.f32.mrb[20].mxu1 }
 0x120   :  { %v1315_v10 = vpop.f32.mrb[23].mxu0  ;;  %v1376_v13 = vpop.f32.mrb[21].mxu1 }
 0x121   :  { %v688_v11 = vadd.f32 %v1313_v7, %v2225_v50  ;;  %v1316_v12 = vadd.f32 %v1315_v10, %v1314_v8  ;;  %v1377_v14 = vadd.f32 %v1376_v13, %v1375_v9  ;;  %v1378_v16 = vpop.f32.mrb[22].mxu1 }
 0x122   :  { %v1379_v19 = vpop.f32.mrb[23].mxu1 }
 0x123   :  { %v691_v17 = vadd.f32 %v1316_v12, %v2225_v50  ;;  %v2259_v20 = vadd.f32 %v1377_v14, %v688_v11  ;;  %v1380_v21 = vadd.f32 %v1379_v19, %v1378_v16 }
 0x125   :  { %v1317_v22 = vpop.f32.mrb[24].mxu0  ;;  %v2261_v23 = vadd.f32 %v1380_v21, %v691_v17 }
 0x126   :  { %v1318_v24 = vpop.f32.mrb[25].mxu0 }
 0x127   :  { %v1319_v25 = vadd.f32 %v1318_v24, %v1317_v22  ;;  %v1320_v26 = vpop.f32.mrb[26].mxu0  ;;  %v1381_v27 = vpop.f32.mrb[24].mxu1 }
 0x128   :  { %v1321_v28 = vpop.f32.mrb[27].mxu0  ;;  %v1382_v32 = vpop.f32.mrb[25].mxu1 }
 0x129   :  { %v696_v29 = vadd.f32 %v1319_v25, %v2225_v50  ;;  %v1322_v30 = vadd.f32 %v1321_v28, %v1320_v26  ;;  %v1383_v33 = vadd.f32 %v1382_v32, %v1381_v27  ;;  %v1384_v35 = vpop.f32.mrb[26].mxu1 }
 0x12a   :  { %v1385_v37 = vpop.f32.mrb[27].mxu1 }
 0x12b   :  { %v699_v36 = vadd.f32 %v1322_v30, %v2225_v50  ;;  %v2265_v38 = vadd.f32 %v1383_v33, %v696_v29  ;;  %v1386_v39 = vadd.f32 %v1385_v37, %v1384_v35 }
 0x12d   :  { %v1323_v40 = vpop.f32.mrb[28].mxu0  ;;  %v2267_v41 = vadd.f32 %v1386_v39, %v699_v36 }
 0x12e   :  { %v1324_v42 = vpop.f32.mrb[29].mxu0 }
 0x12f   :  { %v1325_v43 = vadd.f32 %v1324_v42, %v1323_v40  ;;  %v1326_v44 = vpop.f32.mrb[30].mxu0  ;;  %v1387_v45 = vpop.f32.mrb[28].mxu1 }
 0x130   :  { %v1327_v46 = vpop.f32.mrb[31].mxu0  ;;  %v1388_v52 = vpop.f32.mrb[29].mxu1 }
 0x131   :  { %v704_v48 = vadd.f32 %v1325_v43, %v2225_v50  ;;  %v1328_v49 = vadd.f32 %v1327_v46, %v1326_v44  ;;  %v1389_v53 = vadd.f32 %v1388_v52, %v1387_v45  ;;  %v1390_v54 = vpop.f32.mrb[30].mxu1 }
 0x132   :  { %v1391_v56 = vpop.f32.mrb[31].mxu1 }
 0x133   :  { %v707_v55 = vadd.f32 %v1328_v49, %v2225_v50  ;;  %v2271_v57 = vadd.f32 %v1389_v53, %v704_v48  ;;  %v1392_v58 = vadd.f32 %v1391_v56, %v1390_v54 }
 0x135   :  { %v1409_v59 = vpop.f32.mrb[32].mxu0  ;;  %v2273_v60 = vadd.f32 %v1392_v58, %v707_v55 }
 0x136   :  { %v1410_v61 = vpop.f32.mrb[33].mxu0 }
 0x137   :  { %v1411_v62 = vadd.f32 %v1410_v61, %v1409_v59  ;;  %v1412_v0 = vpop.f32.mrb[34].mxu0  ;;  %v1502_v4 = vpop.f32.mrb[32].mxu1 }
 0x138   :  { %v1413_v3 = vpop.f32.mrb[35].mxu0  ;;  %v938_v8 = vpop.f32.mrb[33].mxu1 }
 0x139   :  { %v1414_v6 = vadd.f32 %v1413_v3, %v1412_v0  ;;  %v842_v7 = vadd.f32 %v1411_v62, %v2229_v63  ;;  %v1503_v9 = vpop.f32.mrb[34].mxu1 }
 0x13a   :  { %v941_v11 = vpop.f32.mrb[35].mxu1 }
 0x13b   :  { %v939_v10 = vadd.f32 %v938_v8, %v842_v7  ;;  %v845_v50 = vadd.f32 %v1414_v6, %v2231_v2 }
 0x13d   :  { %v1001_v12 = vmax.f32 %v939_v10, 0.0  ;;  %v942_v13 = vadd.f32 %v941_v11, %v845_v50  ;;  %v1415_v14 = vpop.f32.mrb[36].mxu0 }
 0x13e   :  { %v1416_v16 = vpop.f32.mrb[37].mxu0 }
 0x13f   :  { %v1002_v17 = vmax.f32 %v942_v13, 0.0  ;;  %v1417_v19 = vadd.f32 %v1416_v16, %v1415_v14  ;;  %v1418_v21 = vpop.f32.mrb[38].mxu0  ;;  %1548 = vmatprep.mubr.f32.mxu1 %v1001_v12  ;;  %v1506_v24 = vpop.f32.mrb[36].mxu1 }
 0x140   :  { %v1419_v22 = vpop.f32.mrb[39].mxu0  ;;  %v954_v63 = vpop.f32.mrb[37].mxu1 }
 0x141   :  { %v850_v25 = vadd.f32 %v1417_v19, %v2235_v15  ;;  %v1420_v26 = vadd.f32 %v1419_v22, %v1418_v21  ;;  %1549 = vmatmul.mubr.f32.vlgmr.msra.gmra.mrb[48].mxu1 %v1002_v17  ;;  %v1507_v27 = vpop.f32.mrb[38].mxu1 }
 0x142   :  { %v957_v29 = vpop.f32.mrb[39].mxu1 }
 0x143   :  { %v853_v28 = vadd.f32 %v1420_v26, %v2237_v18  ;;  %v947_v2 = vadd.f32 %v1502_v4, %v850_v25 }
 0x145   :  { %v1421_v30 = vpop.f32.mrb[40].mxu0  ;;  %v1003_v32 = vmax.f32 %v947_v2, 0.0  ;;  %v950_v33 = vadd.f32 %v1503_v9, %v853_v28 }
 0x146   :  { %v1422_v35 = vpop.f32.mrb[41].mxu0 }
 0x147   :  { %v1423_v36 = vadd.f32 %v1422_v35, %v1421_v30  ;;  %v1424_v37 = vpop.f32.mrb[42].mxu0  ;;  %1551 = vmatprep.mubr.f32.mxu1 %v1003_v32  ;;  %v1004_v39 = vmax.f32 %v950_v33, 0.0  ;;  %v1510_v42 = vpop.f32.mrb[40].mxu1 }
 0x148   :  { %v1425_v40 = vpop.f32.mrb[43].mxu0  ;;  %v970_v44 = vpop.f32.mrb[41].mxu1 }
 0x149   :  { %v1426_v43 = vadd.f32 %v1425_v40, %v1424_v37  ;;  %1552 = vmatmul.mubr.f32.gmra.mrb[50].mxu1 %v1004_v39  ;;  %v858_v15 = vadd.f32 %v1423_v36, %v2241_v31  ;;  %v1511_v45 = vpop.f32.mrb[42].mxu1 }
 0x14a   :  { %v973_v48 = vpop.f32.mrb[43].mxu1 }
 0x14b   :  { %v955_v46 = vadd.f32 %v954_v63, %v858_v15  ;;  %v861_v18 = vadd.f32 %v1426_v43, %v2243_v34 }
 0x14d   :  { %v1005_v49 = vmax.f32 %v955_v46, 0.0  ;;  %v958_v52 = vadd.f32 %v957_v29, %v861_v18  ;;  %v1427_v53 = vpop.f32.mrb[44].mxu0 }
 0x14e   :  { %v1428_v54 = vpop.f32.mrb[45].mxu0 }
 0x14f   :  { %v1006_v55 = vmax.f32 %v958_v52, 0.0  ;;  %v1429_v56 = vadd.f32 %v1428_v54, %v1427_v53  ;;  %v1430_v58 = vpop.f32.mrb[46].mxu0  ;;  %1554 = vmatprep.mubr.f32.mxu1 %v1005_v49  ;;  %v2281_v61 = vpop.f32.mrb[44].mxu1 }
 0x150   :  { %v1431_v59 = vpop.f32.mrb[47].mxu0  ;;  %v986_v0 = vpop.f32.mrb[45].mxu1 }
 0x151   :  { %v866_v62 = vadd.f32 %v1429_v56, %v2247_v47  ;;  %v1432_v31 = vadd.f32 %v1431_v59, %v1430_v58  ;;  %1555 = vmatmul.mubr.f32.gmra.mrb[52].mxu1 %v1006_v55  ;;  %v1515_v3 = vpop.f32.mrb[46].mxu1  ;;  %v1264_v56 = vld [vmem:[%s2365_s4] ss:$0 sm:$0xff] }
 0x152   :  { %v989_v6 = vpop.f32.mrb[47].mxu1 }
 0x153   :  { %v869_v34 = vadd.f32 %v1432_v31, %v2249_v51  ;;  %v963_v4 = vadd.f32 %v1506_v24, %v866_v62 }
 0x155   :  { %v1433_v7 = vpop.f32.mrb[48].mxu0  ;;  %v1007_v8 = vmax.f32 %v963_v4, 0.0  ;;  %v966_v9 = vadd.f32 %v1507_v27, %v869_v34 }
 0x156   :  { %v1434_v10 = vpop.f32.mrb[49].mxu0 }
 0x157   :  { %v1435_v50 = vadd.f32 %v1434_v10, %v1433_v7  ;;  %v1436_v11 = vpop.f32.mrb[50].mxu0  ;;  %1557 = vmatprep.mubr.f32.mxu1 %v1007_v8  ;;  %v1008_v12 = vmax.f32 %v966_v9, 0.0 }
 0x158   :  { %v1437_v13 = vpop.f32.mrb[51].mxu0 }
 0x159   :  { %v1438_v14 = vadd.f32 %v1437_v13, %v1436_v11  ;;  %1558 = vmatmul.mubr.f32.gmra.mrb[54].mxu1 %v1008_v12  ;;  %v874_v47 = vadd.f32 %v1435_v50, %v2253_v1 }
 0x15b   :  { %v971_v16 = vadd.f32 %v970_v44, %v874_v47  ;;  %v877_v17 = vadd.f32 %v1438_v14, %v2255_v5 }
 0x15d   :  { %v1009_v19 = vmax.f32 %v971_v16, 0.0  ;;  %v974_v51 = vadd.f32 %v973_v48, %v877_v17  ;;  %v1439_v21 = vpop.f32.mrb[52].mxu0 }
 0x15e   :  { %v1440_v22 = vpop.f32.mrb[53].mxu0 }
 0x15f   :  { %v1010_v24 = vmax.f32 %v974_v51, 0.0  ;;  %v1441_v25 = vadd.f32 %v1440_v22, %v1439_v21  ;;  %v1442_v26 = vpop.f32.mrb[54].mxu0  ;;  %1560 = vmatprep.mubr.f32.mxu1 %v1009_v19 }
 0x160   :  { %v1443_v63 = vpop.f32.mrb[55].mxu0 }
 0x161   :  { %v882_v27 = vadd.f32 %v1441_v25, %v2259_v20  ;;  %v1444_v28 = vadd.f32 %v1443_v63, %v1442_v26  ;;  %1561 = vmatmul.mubr.f32.gmra.mrb[56].mxu1 %v1010_v24 }
 0x163   :  { %v885_v2 = vadd.f32 %v1444_v28, %v2261_v23  ;;  %v979_v29 = vadd.f32 %v1510_v42, %v882_v27 }
 0x165   :  { %v1445_v1 = vpop.f32.mrb[56].mxu0  ;;  %v1011_v30 = vmax.f32 %v979_v29, 0.0  ;;  %v982_v32 = vadd.f32 %v1511_v45, %v885_v2 }
 0x166   :  { %v1446_v5 = vpop.f32.mrb[57].mxu0 }
 0x167   :  { %v1447_v33 = vadd.f32 %v1446_v5, %v1445_v1  ;;  %v1448_v35 = vpop.f32.mrb[58].mxu0  ;;  %1563 = vmatprep.mubr.f32.mxu1 %v1011_v30  ;;  %v1012_v36 = vmax.f32 %v982_v32, 0.0 }
 0x168   :  { %v1449_v37 = vpop.f32.mrb[59].mxu0 }
 0x169   :  { %v1450_v39 = vadd.f32 %v1449_v37, %v1448_v35  ;;  %1564 = vmatmul.mubr.f32.gmra.mrb[58].mxu1 %v1012_v36  ;;  %v890_v40 = vadd.f32 %v1447_v33, %v2265_v38 }
 0x16b   :  { %v987_v43 = vadd.f32 %v986_v0, %v890_v40  ;;  %v893_v20 = vadd.f32 %v1450_v39, %v2267_v41 }
 0x16d   :  { %v1013_v15 = vmax.f32 %v987_v43, 0.0  ;;  %v990_v44 = vadd.f32 %v989_v6, %v893_v20  ;;  %v1451_v23 = vpop.f32.mrb[60].mxu0 }
 0x16e   :  { %v1452_v42 = vpop.f32.mrb[61].mxu0 }
 0x16f   :  { %v1014_v46 = vmax.f32 %v990_v44, 0.0  ;;  %v1453_v18 = vadd.f32 %v1452_v42, %v1451_v23  ;;  %v1454_v45 = vpop.f32.mrb[62].mxu0  ;;  %1566 = vmatprep.mubr.f32.mxu1 %v1013_v15 }
 0x170   :  { %v1455_v48 = vpop.f32.mrb[63].mxu0 }
 0x171   :  { %v898_v49 = vadd.f32 %v1453_v18, %v2271_v57  ;;  %v1456_v52 = vadd.f32 %v1455_v48, %v1454_v45  ;;  %1567 = vmatmul.mubr.f32.gmra.mrb[60].mxu1 %v1014_v46 }
 0x173   :  { %v901_v53 = vadd.f32 %v1456_v52, %v2273_v60  ;;  %v995_v38 = vadd.f32 %v2281_v61, %v898_v49 }
 0x175   :  { %v1015_v54 = vmax.f32 %v995_v38, 0.0  ;;  %v998_v55 = vadd.f32 %v1515_v3, %v901_v53 }
 0x177   :  { %1569 = vmatprep.mubr.f32.mxu1 %v1015_v54  ;;  %v1016_v41 = vmax.f32 %v998_v55, 0.0 }
 0x179   :  { %1570 = vmatmul.mubr.f32.gmra.mrb[62].mxu1 %v1016_v41 }
 0x214   :  { %v1550_v58 = vpop.f32.mrb[48].mxu1 }
 0x215   :  { %v1112_v59 = vadd.f32 %v1550_v58, %v1264_v56  ;;  %v1106_v62 = vpop.f32.mrb[49].mxu1 }
 0x216   :  { %v1107_v57 = vadd.f32 %v1264_v56, %v1106_v62 }
 0x217   :  { %1187 = vst.msk [vmem:[%s2366_s5 + $0x8] sm:$0xff] %vm1185_vm1, %v1112_v59 }
 0x218   :  { %1186 = vst.msk [vmem:[%s2366_s5] sm:$0xff] %vm1185_vm1, %v1107_v57 }
 0x21c   :  { %v1553_v60 = vpop.f32.mrb[50].mxu1 }
 0x21d   :  { %v1122_v61 = vadd.f32 %v1553_v60, %v1264_v56  ;;  %v1116_v31 = vpop.f32.mrb[51].mxu1 }
 0x21e   :  { %v1117_v0 = vadd.f32 %v1264_v56, %v1116_v31 }
 0x21f   :  { %1189 = vst.msk [vmem:[%s2366_s5 + $0x18] sm:$0xff] %vm1185_vm1, %v1122_v61 }
 0x220   :  { %1188 = vst.msk [vmem:[%s2366_s5 + $0x10] sm:$0xff] %vm1185_vm1, %v1117_v0 }
 0x224   :  { %v1556_v3 = vpop.f32.mrb[52].mxu1 }
 0x225   :  { %v1132_v34 = vadd.f32 %v1556_v3, %v1264_v56  ;;  %v1126_v4 = vpop.f32.mrb[53].mxu1 }
 0x226   :  { %v1127_v6 = vadd.f32 %v1264_v56, %v1126_v4 }
 0x227   :  { %1191 = vst.msk [vmem:[%s2366_s5 + $0x28] sm:$0xff] %vm1185_vm1, %v1132_v34 }
 0x228   :  { %1190 = vst.msk [vmem:[%s2366_s5 + $0x20] sm:$0xff] %vm1185_vm1, %v1127_v6 }
 0x22c   :  { %v1559_v7 = vpop.f32.mrb[54].mxu1 }
 0x22d   :  { %v1142_v8 = vadd.f32 %v1559_v7, %v1264_v56  ;;  %v1136_v9 = vpop.f32.mrb[55].mxu1 }
 0x22e   :  { %v1137_v10 = vadd.f32 %v1264_v56, %v1136_v9 }
 0x22f   :  { %1193 = vst.msk [vmem:[%s2366_s5 + $0x38] sm:$0xff] %vm1185_vm1, %v1142_v8 }
 0x230   :  { %1192 = vst.msk [vmem:[%s2366_s5 + $0x30] sm:$0xff] %vm1185_vm1, %v1137_v10 }
 0x234   :  { %v1562_v50 = vpop.f32.mrb[56].mxu1 }
 0x235   :  { %v1152_v11 = vadd.f32 %v1562_v50, %v1264_v56  ;;  %v1146_v12 = vpop.f32.mrb[57].mxu1 }
 0x236   :  { %v1147_v13 = vadd.f32 %v1264_v56, %v1146_v12 }
 0x237   :  { %1195 = vst.msk [vmem:[%s2366_s5 + $0x48] sm:$0xff] %vm1185_vm1, %v1152_v11 }
 0x238   :  { %1194 = vst.msk [vmem:[%s2366_s5 + $0x40] sm:$0xff] %vm1185_vm1, %v1147_v13 }
 0x23c   :  { %v1565_v14 = vpop.f32.mrb[58].mxu1 }
 0x23d   :  { %v1162_v47 = vadd.f32 %v1565_v14, %v1264_v56  ;;  %v1156_v16 = vpop.f32.mrb[59].mxu1 }
 0x23e   :  { %v1157_v17 = vadd.f32 %v1264_v56, %v1156_v16 }
 0x23f   :  { %1197 = vst.msk [vmem:[%s2366_s5 + $0x58] sm:$0xff] %vm1185_vm1, %v1162_v47 }
 0x240   :  { %1196 = vst.msk [vmem:[%s2366_s5 + $0x50] sm:$0xff] %vm1185_vm1, %v1157_v17 }
 0x244   :  { %v1568_v19 = vpop.f32.mrb[60].mxu1 }
 0x245   :  { %v1172_v51 = vadd.f32 %v1568_v19, %v1264_v56  ;;  %v1166_v21 = vpop.f32.mrb[61].mxu1 }
 0x246   :  { %v1167_v22 = vadd.f32 %v1264_v56, %v1166_v21 }
 0x247   :  { %1199 = vst.msk [vmem:[%s2366_s5 + $0x68] sm:$0xff] %vm1185_vm1, %v1172_v51 }
 0x248   :  { %1198 = vst.msk [vmem:[%s2366_s5 + $0x60] sm:$0xff] %vm1185_vm1, %v1167_v22 }
 0x24c   :  { %v1571_v24 = vpop.f32.mrb[62].mxu1 }
 0x24d   :  { %v1182_v25 = vadd.f32 %v1571_v24, %v1264_v56  ;;  %v1176_v26 = vpop.f32.mrb[63].mxu1 }
 0x24e   :  { %v1177_v63 = vadd.f32 %v1264_v56, %v1176_v26 }
 0x24f   :  { %1201 = vst.msk [vmem:[%s2366_s5 + $0x78] sm:$0xff] %vm1185_vm1, %v1182_v25 }
 0x250   :  { %1200 = vst.msk [vmem:[%s2366_s5 + $0x70] sm:$0xff] %vm1185_vm1, %v1177_v63 }

</bundles_post_ra>
